<compile_context>
chip_gen: v7x
topology: tpu7x:2x2x1
jax: 0.10.0
libtpu: 0.0.40
codegen_flags: <defaults>
</compile_context>

<pallas_src>
import jax
import jax.numpy as jnp
from jax import lax
from jax.experimental import pallas as pl
from jax.experimental.pallas import tpu as pltpu

_LANES = 128
_SUBLANES = 8
_VMEM_LIMIT_BYTES = 32 * 1024 * 1024  # safe on v5e/v6e (128 MiB phys) and v7x (64 MiB phys)


def _cdiv(a, b):
    return -(-a // b)


def _detect_tensorcores() -> int:
    """Best-effort TensorCore-per-device count (1 on v5e/v6e, 2 on v7x)."""
    try:
        dev = jax.devices()[0]
        for attr in ("num_cores", "core_count"):
            v = getattr(dev, attr, None)
            if v:
                return max(1, int(v))
    except Exception:
        pass
    return 1


def _elementwise_l2(p, t, w, pos_margin, neg_margin):
    """mmdet L2Loss elementwise body in f32. `w` may be None (== all ones)."""
    p = p.astype(jnp.float32)
    t = t.astype(jnp.float32)
    if w is not None:
        w = w.astype(jnp.float32)
        t = jnp.where(w <= 0, jnp.float32(-1.0), t)      # target[weight <= 0] = -1
    if pos_margin > 0:
        p = jnp.where(t == 1.0, p - jnp.float32(pos_margin), p)
    if neg_margin > 0:
        p = jnp.where(t == 0.0, p - jnp.float32(neg_margin), p)
    p = jnp.clip(p, 0.0, 1.0)
    d = p - t
    loss = d * d                                         # |p - t|**2
    if w is not None:
        loss = loss * w
    return loss, w


def _make_l2_loss_kernel(pos_margin, neg_margin, has_weight, need_cnt,
                         br, bpp, rows_valid, need_mask):
    """Kernel factory; all config is static (compiled in/out)."""

    def kernel(*refs):
        if has_weight and need_cnt:
            pred_ref, target_ref, weight_ref, sum_ref, cnt_ref = refs
        elif has_weight:
            pred_ref, target_ref, weight_ref, sum_ref = refs
        else:
            pred_ref, target_ref, sum_ref = refs
            weight_ref = None

        part = pl.program_id(0)   # partition ("core parallel") axis
        step = pl.program_id(1)   # inner ("arbitrary") reduction axis

        @pl.when(step == 0)
        def _init():
            sum_ref[...] = jnp.zeros_like(sum_ref)
            if has_weight and need_cnt:
                cnt_ref[...] = jnp.zeros_like(cnt_ref)

        # Widen narrow dtypes in-kernel (VPU work hidden under the DMA).
        p = pred_ref[...]
        t = target_ref[...]
        w = weight_ref[...] if has_weight else None
        loss, w32 = _elementwise_l2(p, t, w, pos_margin, neg_margin)

        if need_cnt:                                  # implies has_weight
            cnt = (w32 > 0).astype(jnp.float32)

        if need_mask:
            # Grid over-covers the valid rows; zero out the ragged tail (and
            # any fully out-of-range block a partition may loop over).  The
            # mask is a (br, 1) column -> one vsel per vreg in the where.
            row_start = (part * bpp + step) * br      # logical (unclamped)
            valid = rows_valid - row_start            # may be <= 0 or > br
            row_ids = lax.broadcasted_iota(jnp.int32, (br, 1), 0)
            mask = row_ids < valid
            loss = jnp.where(mask, loss, 0.0)
            if need_cnt:
                cnt = jnp.where(mask, cnt, 0.0)

        # Fold the (br, 128) block into the (8, 128) vreg-shaped partial
        # accumulator (VPU adds only); cross-lane reduce happens once in JAX.
        sum_ref[...] += loss.reshape(br // _SUBLANES, _SUBLANES, _LANES).sum(axis=0)
        if need_cnt:
            cnt_ref[...] += cnt.reshape(br // _SUBLANES, _SUBLANES, _LANES).sum(axis=0)

    return kernel


def l2_loss_forward(pred, target, weight=None, *,
                    loss_weight=1.0, pos_margin=-1.0, neg_margin=-1.0,
                    reduction='mean', block_rows=4096, num_partitions=None):
    """Pallas implementation of L2Loss.forward (mmdet semantics).

    Supports reduction in {'mean', 'sum'}. avg_factor follows update_weight:
    (weight > 0).sum() (== element count when weight is None).  'mean' with no
    positive weights divides by zero (NaN), matching the torch module.

    Perf notes:
      * Pass binary weight masks in a narrow dtype (bf16/int8); the kernel
        widens in-kernel, so narrower HBM streams are a direct bandwidth win.
      * On multi-TensorCore chips (v7x) pass num_partitions=2 (or rely on
        auto-detection) so the row loop is sharded with CORE_PARALLEL.
    """
    assert pred.shape == target.shape and pred.size > 0
    if reduction not in ('mean', 'sum'):
        # TODO(synk): reduction='none' (per-element output) is not implemented.
        raise NotImplementedError(f"reduction={reduction!r} not supported")
    # TODO(synk): neg_pos_ub > 0 / hard_mining random-negative resampling
    # (host-side randperm / topk index selection) is not implemented in-kernel.

    has_weight = weight is not None
    if has_weight:
        assert weight.shape == pred.shape
    need_cnt = has_weight and reduction == 'mean'
    pos_margin = float(pos_margin)
    neg_margin = float(neg_margin)

    n_elems = pred.size
    rows_valid = n_elems // _LANES            # full 128-lane rows
    flat_pred = pred.reshape(-1)
    flat_target = target.reshape(-1)
    flat_weight = weight.reshape(-1) if has_weight else None

    loss_sum = jnp.float32(0.0)
    cnt_sum = jnp.float32(0.0)

    use_kernel = rows_valid >= _SUBLANES      # tiny inputs: plain JAX is cheaper
    tail_start = rows_valid * _LANES if use_kernel else 0
    tail_len = n_elems - tail_start

    if use_kernel:
        main_n = rows_valid * _LANES

        def main2d(x):
            # n_elems % 128 == 0 (common case): pure reshape, no HBM copy.
            # Otherwise only the <128-element flat remainder is excluded here
            # and handled in the JAX epilogue below.
            if main_n != n_elems:
                x = x[:main_n]
            return x.reshape(rows_valid, _LANES)

        inputs = [main2d(flat_pred), main2d(flat_target)]
        if has_weight:
            inputs.append(main2d(flat_weight))

        # --- partition the row loop across TensorCores (v7x) ---------------
        if num_partitions is None:
            num_parts = min(2, _detect_tensorcores())
        else:
            num_parts = max(1, int(num_partitions))
        if rows_valid < 64:                   # not worth splitting tiny inputs
            num_parts = 1

        rows_per_part = _cdiv(rows_valid, num_parts)
        br = max(_SUBLANES,
                 (min(int(block_rows), rows_per_part) // _SUBLANES) * _SUBLANES)
        n_blocks_total = _cdiv(rows_valid, br)
        bpp = _cdiv(n_blocks_total, num_parts)           # blocks per partition
        need_mask = (num_parts * bpp * br != rows_valid)  # ragged / over-cover
        need_clamp = (num_parts * bpp != n_blocks_total)  # fully-OOB grid pts

        if need_clamp:
            def in_map(p, i):
                return (jnp.minimum(p * bpp + i, n_blocks_total - 1), 0)
        else:
            def in_map(p, i):
                return (p * bpp + i, 0)

        in_spec = pl.BlockSpec((br, _LANES), in_map)
        out_spec = pl.BlockSpec((_SUBLANES, _LANES), lambda p, i: (p, 0))
        part_shape = jax.ShapeDtypeStruct((num_parts * _SUBLANES, _LANES),
                                          jnp.float32)
        if need_cnt:
            out_shape = (part_shape, part_shape)
            out_specs = (out_spec, out_spec)
        else:
            out_shape = part_shape
            out_specs = out_spec

        kernel = _make_l2_loss_kernel(pos_margin, neg_margin, has_weight,
                                      need_cnt, br, bpp, rows_valid, need_mask)

        # CORE_PARALLEL actually shards the leading axis across TensorCores on
        # multi-TC chips; with a single partition it degenerates to a size-1
        # serial axis, so we just mark it arbitrary.
        part_sem = pltpu.CORE_PARALLEL if num_parts > 1 else "arbitrary"

        outs = pl.pallas_call(
            kernel,
            out_shape=out_shape,
            grid_spec=pltpu.PrefetchScalarGridSpec(
                num_scalar_prefetch=0,
                grid=(num_parts, bpp),
                in_specs=[in_spec] * len(inputs),
                out_specs=out_specs),
            compiler_params=pltpu.CompilerParams(
                dimension_semantics=(part_sem, "arbitrary"),
                vmem_limit_bytes=_VMEM_LIMIT_BYTES),
        )(*inputs)

        if need_cnt:
            sum_parts, cnt_parts = outs
            loss_sum = loss_sum + jnp.sum(sum_parts)
            cnt_sum = cnt_sum + jnp.sum(cnt_parts)
        else:
            loss_sum = loss_sum + jnp.sum(outs)

    # --- tiny plain-JAX epilogue: <128-element remainder (or tiny inputs) ---
    if tail_len:
        tp = flat_pred[tail_start:]
        tt = flat_target[tail_start:]
        tw = flat_weight[tail_start:] if has_weight else None
        tloss, tw32 = _elementwise_l2(tp, tt, tw, pos_margin, neg_margin)
        loss_sum = loss_sum + jnp.sum(tloss)
        if need_cnt:
            cnt_sum = cnt_sum + jnp.sum((tw32 > 0).astype(jnp.float32))

    if reduction == 'mean':
        if has_weight:
            avg_factor = cnt_sum                 # (weight > 0).sum()
        else:
            avg_factor = jnp.float32(n_elems)    # all-ones weight
        # Matches torch semantics: no epsilon guard (NaN if no positive weight).
        loss = loss_sum / avg_factor
    else:  # 'sum'
        loss = loss_sum

    return jnp.float32(loss_weight) * loss


if __name__ == "__main__":
    key = jax.random.PRNGKey(0)
    k1, k2, k3, k4, k5 = jax.random.split(key, 5)

    def ref_forward(pred, target, weight=None, loss_weight=1.0,
                    pos_margin=-1.0, neg_margin=-1.0, reduction='mean'):
        p = pred.astype(jnp.float32)
        t = target.astype(jnp.float32)
        w = jnp.ones_like(t) if weight is None else weight.astype(jnp.float32)
        t = jnp.where(w <= 0, jnp.float32(-1.0), t)
        if pos_margin > 0:
            p = jnp.where(t == 1.0, p - pos_margin, p)
        if neg_margin > 0:
            p = jnp.where(t == 0.0, p - neg_margin, p)
        p = jnp.clip(p, 0.0, 1.0)
        loss = jnp.abs(p - t) ** 2 * w
        if reduction == 'mean':
            return loss_weight * jnp.sum(loss) / jnp.sum((w > 0).astype(jnp.float32))
        return loss_weight * jnp.sum(loss)

    # --- test 1: default path (weight=None, mean), f32, aligned 2-D ---------
    N, D = 16, 128
    pred = jax.random.uniform(k1, (N, D), dtype=jnp.float32)
    target = (jax.random.uniform(k2, (N, D)) > 0.7).astype(jnp.float32)
    out = jax.block_until_ready(l2_loss_forward(pred, target))
    ref = ref_forward(pred, target)
    assert jnp.allclose(out, ref, rtol=1e-5, atol=1e-5), (out, ref)

    # --- test 2: weighted + margins, bf16 inputs, 3-D, ragged row count -----
    shape = (2, 4, 160)
    pred_b = jax.random.uniform(k3, shape, dtype=jnp.float32).astype(jnp.bfloat16)
    target_b = (jax.random.uniform(k4, shape) > 0.6).astype(jnp.bfloat16)
    weight_b = (jax.random.uniform(k5, shape) > 0.3).astype(jnp.bfloat16)
    out2 = jax.block_until_ready(l2_loss_forward(
        pred_b, target_b, weight_b, loss_weight=0.5,
        pos_margin=0.1, neg_margin=0.05, reduction='mean'))
    ref2 = ref_forward(pred_b, target_b, weight_b, loss_weight=0.5,
                       pos_margin=0.1, neg_margin=0.05, reduction='mean')
    assert jnp.allclose(out2, ref2, rtol=1e-5, atol=1e-5), (out2, ref2)

    # --- test 3: weighted sum reduction (cnt path compiled out) -------------
    out3 = jax.block_until_ready(l2_loss_forward(
        pred_b, target_b, weight_b, loss_weight=0.5, reduction='sum'))
    ref3 = ref_forward(pred_b, target_b, weight_b, loss_weight=0.5,
                       reduction='sum')
    assert jnp.allclose(out3, ref3, rtol=1e-5, atol=1e-5), (out3, ref3)

    # --- test 4: n_elems not multiple of 128 (kernel + JAX tail epilogue) ---
    shape4 = (9, 130)   # 1170 elements: 9 full rows + 18-element tail
    pred4 = jax.random.uniform(k1, shape4, dtype=jnp.float32)
    target4 = (jax.random.uniform(k2, shape4) > 0.5).astype(jnp.float32)
    weight4 = (jax.random.uniform(k3, shape4) > 0.2).astype(jnp.float32)
    out4 = jax.block_until_ready(l2_loss_forward(pred4, target4, weight4))
    ref4 = ref_forward(pred4, target4, weight4)
    assert jnp.allclose(out4, ref4, rtol=1e-5, atol=1e-5), (out4, ref4)

    # --- test 5: tiny input (< 8 rows) -> plain-JAX fallback path -----------
    shape5 = (5, 7)
    pred5 = jax.random.uniform(k4, shape5, dtype=jnp.float32)
    target5 = (jax.random.uniform(k5, shape5) > 0.5).astype(jnp.float32)
    out5 = jax.block_until_ready(l2_loss_forward(pred5, target5, reduction='sum'))
    ref5 = ref_forward(pred5, target5, reduction='sum')
    assert jnp.allclose(out5, ref5, rtol=1e-5, atol=1e-5), (out5, ref5)

    print("KERNEL_OK")
</pallas_src>

<mosaic_0001>
module attributes {stable_mosaic.version = 11 : i64} {
  func.func @kernel(%arg0: i32, %arg1: i32, %arg2: memref<16x128xf32, #tpu.memory_space<vmem>>, %arg3: memref<16x128xf32, #tpu.memory_space<vmem>>, %arg4: memref<8x128xf32, #tpu.memory_space<vmem>>) attributes {dimension_semantics = [#tpu.dimension_semantics<arbitrary>, #tpu.dimension_semantics<arbitrary>], iteration_bounds = array<i64: 1, 1>, scalar_prefetch = 0 : i64, scratch_operands = 0 : i64, tpu.core_type = #tpu.core_type<tc>, window_params = [{transform_indices = @transform_0, window_bounds = array<i64: 16, 128>}, {transform_indices = @transform_1, window_bounds = array<i64: 16, 128>}, {transform_indices = @transform_2, window_bounds = array<i64: 8, 128>}]} {
    %c0_i32 = arith.constant 0 : i32
    %0 = arith.cmpi eq, %arg1, %c0_i32 : i32
    %1 = arith.extui %0 : i1 to i32
    %c0_i32_0 = arith.constant 0 : i32
    %2 = arith.cmpi ne, %1, %c0_i32_0 : i32
    scf.if %2 {
      %cst_10 = arith.constant 0.000000e+00 : f32
      %16 = vector.broadcast %cst_10 : f32 to vector<8x128xf32>
      %c0_11 = arith.constant 0 : index
      %c0_12 = arith.constant 0 : index
      %17 = vector.load %arg4[%c0_11, %c0_12] : memref<8x128xf32, #tpu.memory_space<vmem>>, vector<8x128xf32>
      tpu.vector_store %arg4[%c0_11, %c0_12], %16 {strides = array<i32>} : memref<8x128xf32, #tpu.memory_space<vmem>>, vector<8x128xf32>,
    } else {
    }
    %c0 = arith.constant 0 : index
    %c0_1 = arith.constant 0 : index
    %3 = vector.load %arg2[%c0, %c0_1] : memref<16x128xf32, #tpu.memory_space<vmem>>, vector<16x128xf32>
    %c0_2 = arith.constant 0 : index
    %c0_3 = arith.constant 0 : index
    %4 = vector.load %arg3[%c0_2, %c0_3] : memref<16x128xf32, #tpu.memory_space<vmem>>, vector<16x128xf32>
    %cst = arith.constant 0.000000e+00 : f32
    %cst_4 = arith.constant 1.000000e+00 : f32
    %5 = vector.broadcast %cst : f32 to vector<16x128xf32>
    %6 = arith.maximumf %5, %3 : vector<16x128xf32>
    %7 = vector.broadcast %cst_4 : f32 to vector<16x128xf32>
    %8 = arith.minimumf %7, %6 : vector<16x128xf32>
    %9 = arith.subf %8, %4 : vector<16x128xf32>
    %10 = arith.mulf %9, %9 : vector<16x128xf32>
    %c0_5 = arith.constant 0 : index
    %c0_6 = arith.constant 0 : index
    %11 = vector.load %arg4[%c0_5, %c0_6] : memref<8x128xf32, #tpu.memory_space<vmem>>, vector<8x128xf32>
    %12 = vector.shape_cast %10 : vector<16x128xf32> to vector<2x8x128xf32>
    %cst_7 = arith.constant dense<0.000000e+00> : vector<8x128xf32>
    %13 = vector.multi_reduction <add>, %12, %cst_7 [0] : vector<2x8x128xf32> to vector<8x128xf32>
    %14 = arith.addf %11, %13 : vector<8x128xf32>
    %c0_8 = arith.constant 0 : index
    %c0_9 = arith.constant 0 : index
    %15 = vector.load %arg4[%c0_8, %c0_9] : memref<8x128xf32, #tpu.memory_space<vmem>>, vector<8x128xf32>
    tpu.vector_store %arg4[%c0_8, %c0_9], %14 {strides = array<i32>} : memref<8x128xf32, #tpu.memory_space<vmem>>, vector<8x128xf32>,
    return
  }
  func.func @transform_0(%arg0: i32, %arg1: i32) -> (i32, i32) {
    %c1_i32 = arith.constant 1 : i32
    %0 = arith.muli %arg0, %c1_i32 : i32
    %1 = arith.addi %0, %arg1 : i32
    %c0_i32 = arith.constant 0 : i32
    %c0_i32_0 = arith.constant 0 : i32
    return %1, %c0_i32 : i32, i32
  }
  func.func @transform_1(%arg0: i32, %arg1: i32) -> (i32, i32) {
    %c1_i32 = arith.constant 1 : i32
    %0 = arith.muli %arg0, %c1_i32 : i32
    %1 = arith.addi %0, %arg1 : i32
    %c0_i32 = arith.constant 0 : i32
    %c0_i32_0 = arith.constant 0 : i32
    return %1, %c0_i32 : i32, i32
  }
  func.func @transform_2(%arg0: i32, %arg1: i32) -> (i32, i32) {
    %c0_i32 = arith.constant 0 : i32
    %c0_i32_0 = arith.constant 0 : i32
    return %arg0, %c0_i32 : i32, i32
  }
}

</mosaic_0001>

<bundles_post_ra>
// kernel: tpu_custom_call.1
= control target key start
LH: loop header
LB: loop body
LE: loop exit
PB: predicated region body
PF: predicated region fallthrough
CT: control target
= control target key end

     0   :  { %7 = vsyncpa [#allocation3], 0  ;;  %s223_s0 = inlined_call_operand.hbm [shape: f32[16,128], index: 0, kind: input, shape index: {}]   ;;  %s224_s1 = inlined_call_operand.hbm [shape: f32[16,128], index: 1, kind: input, shape index: {}]   ;;  %s225_s2 = inlined_call_operand.hbm [shape: f32[8,128], index: 2, kind: output, shape index: {}]  }
   0x1   :  { %8 = vsyncpa [#allocation6], 0 }
   0x2   :  { %9 = vsyncpa [#allocation4], 0  ;;  %s167_s9 = smov [#allocation2]   ;;  %s95_s13 = scalar_lea.hbm %s223_s0, 256 }
   0x3   :  { %s19_s10 = sshll.u32 %s167_s9, 4  ;;  %p96_p0 = scmp.ne.s32.totalorder %s223_s0, %s95_s13  ;;  %s20_s10 = int_to_ptr.vmem [resolvable:$true] %s19_s10 }
   0x4   :  { %p99_p1 = scmp.lt.u32.totalorder %s95_s13, %s223_s0 }
   0x6   :  { %p101_p2 = pnand %p99_p1, %p96_p0 }
   0x8   :  { %104 = shalt.err (!%p101_p2)
}
   0x9   :  { %s105_s18 = scalar_lea.vmem %s20_s10, 256  ;;  %p110_p4 = scmp.lt.s32.totalorder %s20_s10, %s20_s10 }
   0xa   :  { %p106_p3 = scmp.ne.s32.totalorder %s20_s10, %s105_s18  ;;  %p111_p5 = scmp.lt.s32.totalorder %s105_s18, %s105_s18 }
   0xc   :  { %p112_p6 = por %p111_p5, %p110_p4 }
   0xe   :  { %p113_p7 = pnand %p112_p6, %p106_p3 }
  0x10   :  { %116 = shalt.err (!%p113_p7)
}
  0x11   :  { %s168_s19 = smov 128   ;;  %s169_s20 = smov 8  }
  0x12   :  { %25 = dma.hbm_to_vmem [thread:$0]  %s223_s0, 256, %s20_s10, [#allocation3], %s168_s19, %s168_s19, %s169_s20  }
  0x13   :  { %s170_s23 = smov [#allocation5]   ;;  %s117_s27 = scalar_lea.hbm %s224_s1, 256 }
  0x14   :  { %s35_s24 = sshll.u32 %s170_s23, 4  ;;  %p118_p8 = scmp.ne.s32.totalorder %s224_s1, %s117_s27  ;;  %s36_s24 = int_to_ptr.vmem [resolvable:$true] %s35_s24 }
  0x15   :  { %p121_p9 = scmp.lt.u32.totalorder %s117_s27, %s224_s1 }
  0x17   :  { %p123_p10 = pnand %p121_p9, %p118_p8 }
  0x19   :  { %126 = shalt.err (!%p123_p10)
}
  0x1a   :  { %s127_s4 = scalar_lea.vmem %s36_s24, 256  ;;  %p132_p12 = scmp.lt.s32.totalorder %s36_s24, %s36_s24 }
  0x1b   :  { %p128_p11 = scmp.ne.s32.totalorder %s36_s24, %s127_s4  ;;  %p133_p13 = scmp.lt.s32.totalorder %s127_s4, %s127_s4 }
  0x1d   :  { %p134_p0 = por %p133_p13, %p132_p12 }
  0x1f   :  { %p135_p1 = pnand %p134_p0, %p128_p11 }
  0x21   :  { %138 = shalt.err (!%p135_p1)
}
  0x22   :  { %41 = dma.hbm_to_vmem [thread:$0]  %s224_s1, 256, %s36_s24, [#allocation6], %s168_s19, %s168_s19, %s169_s20  }
  0x23   :  { %161 = dma.done.wait [#allocation3], 256  }
  0x24   :  { %162 = vsyncadd [#allocation3], 4294967040 }
  0x25   :  { %163 = dma.done.wait [#allocation6], 256  }
  0x26   :  { %164 = vsyncadd [#allocation6], 4294967040  ;;  %v57_v0 = vld [vmem:[#allocation2] sm:$0xff]  ;;  %v58_v1 = vld [vmem:[#allocation2 + $0x8] sm:$0xff]  ;;  %s171_s6 = smov [#allocation7]  }
  0x27   :  { %v61_v2 = vmax.f32 %v57_v0, 0.0  ;;  %v62_v3 = vmax.f32 %v58_v1, 0.0  ;;  %v59_v4 = vld [vmem:[#allocation5] sm:$0xff]  ;;  %v60_v5 = vld [vmem:[#allocation5 + $0x8] sm:$0xff]  ;;  %s79_s7 = sshll.u32 %s171_s6, 4  ;;  %s80_s7 = int_to_ptr.vmem [resolvable:$true] %s79_s7 }
  0x28   :  { %s139_s1 = scalar_lea.vmem %s80_s7, 128  ;;  %p144_p3 = scmp.lt.s32.totalorder %s80_s7, %s80_s7 }
  0x29   :  { %v63_v6 = vmin.f32 %v61_v2, 1.0  ;;  %v64_v7 = vmin.f32 %v62_v3, 1.0  ;;  %p140_p2 = scmp.ne.s32.totalorder %s80_s7, %s139_s1  ;;  %p145_p4 = scmp.lt.s32.totalorder %s139_s1, %s139_s1 }
  0x2b   :  { %v65_v8 = vsub.f32 %v63_v6, %v59_v4  ;;  %v66_v9 = vsub.f32 %v64_v7, %v60_v5  ;;  %p146_p5 = por %p145_p4, %p144_p3 }
  0x2d   :  { %v67_v10 = vmul.f32 %v65_v8, %v65_v8  ;;  %v68_v11 = vmul.f32 %v66_v9, %v66_v9  ;;  %p147_p6 = pnand %p146_p5, %p140_p2 }
  0x2f   :  { %v70_v12 = vadd.f32 %v68_v11, %v67_v10 }
  0x31   :  { %72 = vst [vmem:[#allocation7] sm:$0xff] %v70_v12 }
  0x32   :  { %150 = shalt.err (!%p147_p6)
}
  0x33   :  { %s151_s10 = scalar_lea.hbm %s225_s2, 128 }
  0x34   :  { %p152_p7 = scmp.ne.s32.totalorder %s225_s2, %s151_s10  ;;  %p155_p8 = scmp.lt.u32.totalorder %s151_s10, %s225_s2 }
  0x36   :  { %p157_p9 = pnand %p155_p8, %p152_p7 }
  0x38   :  { %160 = shalt.err (!%p157_p9)
}
  0x39   :  { %82 = dma.vmem_to_hbm [thread:$0]  %s80_s7, 128, %s225_s2, [#allocation4]  }
  0x3a   :  { %165 = dma.done.wait [#allocation4], 128  }
  0x3b   :  { %166 = vsyncadd [#allocation4], 4294967168 }
  0x3c   :  { %86 = vsyncpa [#allocation3], 1 }
  0x3d   :  { %87 = vsyncpa [#allocation6], 1 }
  0x3e   :  { %88 = vsyncpa [#allocation4], 1 }

</bundles_post_ra>
